<compile_context>
chip_gen: v6e
topology: v6e:2x2x1
jax: 0.10.0
libtpu: 0.0.40
codegen_flags: <defaults>
</compile_context>

<pallas_src>
import math
import numpy as np
import jax
import jax.numpy as jnp
from jax.experimental import pallas as pl
from jax.experimental.pallas import tpu as pltpu

D_MODEL = 32
N_HEAD = 4
HEAD_DIM = D_MODEL // N_HEAD
SEQ = 8
BATCH = 2
FF_DIM = 4 * D_MODEL
EPS = 1e-5


def _layer_norm(v, g, b):
    mu = jnp.mean(v, axis=-1, keepdims=True)
    var = jnp.mean((v - mu) ** 2, axis=-1, keepdims=True)
    return (v - mu) * jax.lax.rsqrt(var + EPS) * g + b


def transformer_block(x, params, n_head=N_HEAD):
    """x: (B, S, D) float32. params: PyTorch-layout weights (see init_params)."""
    B, S, D = x.shape
    H = n_head
    HD = D // H
    HS = H * S
    scale = 1.0 / math.sqrt(HD)
    f32 = jnp.float32

    # ---- one-time host-side weight prep (outside the kernel) ----------------
    ln1_g = params["ln1_g"].reshape(1, D).astype(f32)
    ln1_b = params["ln1_b"].reshape(1, D).astype(f32)
    ln2_g = params["ln2_g"].reshape(1, D).astype(f32)
    ln2_b = params["ln2_b"].reshape(1, D).astype(f32)

    in_w = params["in_w"].astype(f32)                       # (3D, D) torch [out, in]
    in_b = params["in_b"].astype(f32)                       # (3D,)
    # Split packed in_proj into Q/K/V, transpose to [in, out]; fold the
    # 1/sqrt(HD) attention scale into the Q weights/bias.
    wq_t = in_w[:D, :].T * scale                             # (D, D)
    bq = (in_b[:D] * scale).reshape(1, D)
    wk_t = in_w[D:2 * D, :].T                                # (D, D)
    bk = in_b[D:2 * D].reshape(1, D)
    wv_t = in_w[2 * D:, :].T                                 # (D, D)
    bv = in_b[2 * D:].reshape(1, D)

    # Fuse out_proj followed by proj into one linear:
    #   y = (a @ Wo^T + bo) @ Wp^T + bp = a @ (Wo^T Wp^T) + (bo Wp^T + bp)
    w_op_t = (params["out_w"].T @ params["proj_w"].T).astype(f32)        # (D, D)
    b_op = (params["out_b"].reshape(1, D) @ params["proj_w"].T
            + params["proj_b"].reshape(1, D)).astype(f32)                # (1, D)

    w1_t = params["ffn_w1"].T.astype(f32)                    # (D, FF)
    b1 = params["ffn_b1"].reshape(1, -1).astype(f32)
    w2_t = params["ffn_w2"].T.astype(f32)                    # (FF, D)
    b2 = params["ffn_b2"].reshape(1, D).astype(f32)

    # Host-precomputed block-diagonal helpers for head-batched attention.
    #   mask_bd[h*S+j, c] = 1  iff column c belongs to head h        -> (HS, D)
    #   ones_bd[r, c]     = 1  iff rows r and c are in the same head -> (HS, HS)
    row_head = jnp.arange(HS, dtype=jnp.int32) // S
    col_head = jnp.arange(D, dtype=jnp.int32) // HD
    mask_bd = (row_head[:, None] == col_head[None, :]).astype(f32)
    ones_bd = (row_head[:, None] == row_head[None, :]).astype(f32)

    weights = [ln1_g, ln1_b, wq_t, bq, wk_t, bk, wv_t, bv,
               mask_bd, ones_bd, w_op_t, b_op,
               ln2_g, ln2_b, w1_t, b1, w2_t, b2]

    def kernel(x_ref, ln1_g_ref, ln1_b_ref, wq_ref, bq_ref, wk_ref, bk_ref,
               wv_ref, bv_ref, mask_ref, ones_ref, wop_ref, bop_ref,
               ln2_g_ref, ln2_b_ref, w1_ref, b1_ref, w2_ref, b2_ref, o_ref):
        xx = x_ref[0]                                                    # (S, D)

        # ---- pre-LN 1 + multi-head self-attention ---------------------------
        xn = _layer_norm(xx, ln1_g_ref[...], ln1_b_ref[...])
        q = jnp.dot(xn, wq_ref[...], preferred_element_type=jnp.float32) + bq_ref[...]
        k = jnp.dot(xn, wk_ref[...], preferred_element_type=jnp.float32) + bk_ref[...]
        v = jnp.dot(xn, wv_ref[...], preferred_element_type=jnp.float32) + bv_ref[...]

        # Block-diagonal packed K / V: row block h contains only head-h columns.
        mbd = mask_ref[...]                                              # (HS, D)
        k_bd = jnp.concatenate([k] * H, axis=0) * mbd                    # (HS, D)
        v_bd = jnp.concatenate([v] * H, axis=0) * mbd                    # (HS, D)

        # All-head scores in one matmul: s[i, h*S+j] = <q_h[i], k_h[j]>
        # (scale already folded into wq/bq).
        s = jax.lax.dot_general(q, k_bd, (((1,), (1,)), ((), ())),
                                preferred_element_type=jnp.float32)      # (S, HS)

        # Softmax is shift-invariant per row, so the global row max works for
        # every head block; per-head denominators via one matmul with ones_bd.
        m = jnp.max(s, axis=-1, keepdims=True)
        p = jnp.exp(s - m)
        denom = jnp.dot(p, ones_ref[...], preferred_element_type=jnp.float32)
        p = p * pl.reciprocal(denom, approx=False)

        # p @ V_bd yields the head-concatenated attention output directly.
        o_cat = jnp.dot(p, v_bd, preferred_element_type=jnp.float32)     # (S, D)
        attn = jnp.dot(o_cat, wop_ref[...],
                       preferred_element_type=jnp.float32) + bop_ref[...]
        x1 = xx + attn                                # dropout == identity (eval)

        # ---- pre-LN 2 + FFN --------------------------------------------------
        xn2 = _layer_norm(x1, ln2_g_ref[...], ln2_b_ref[...])
        h1 = jnp.maximum(jnp.dot(xn2, w1_ref[...],
                                 preferred_element_type=jnp.float32) + b1_ref[...], 0.0)
        ffn = jnp.dot(h1, w2_ref[...],
                      preferred_element_type=jnp.float32) + b2_ref[...]

        o_ref[0] = (x1 + ffn).astype(o_ref.dtype)     # dropout == identity (eval)

    # Weights: full-array blocks with a constant block index -> DMA'd once and
    # kept resident across grid steps.
    weight_specs = [pl.BlockSpec(w.shape, lambda b: (0, 0)) for w in weights]

    out = pl.pallas_call(
        kernel,
        out_shape=jax.ShapeDtypeStruct((B, S, D), x.dtype),
        grid=(B,),
        in_specs=[pl.BlockSpec((1, S, D), lambda b: (b, 0, 0))] + weight_specs,
        out_specs=pl.BlockSpec((1, S, D), lambda b: (b, 0, 0)),
        compiler_params=pltpu.CompilerParams(
            dimension_semantics=("parallel",)),   # v7x: one batch element per TC
    )(x, *weights)
    return out


def init_params(key):
    ks = jax.random.split(key, 9)
    f32 = jnp.float32
    return {
        "ln1_g": jnp.ones((D_MODEL,), f32),
        "ln1_b": jnp.zeros((D_MODEL,), f32),
        "ln2_g": jnp.ones((D_MODEL,), f32),
        "ln2_b": jnp.zeros((D_MODEL,), f32),
        # MHA packed in_proj (q, k, v stacked) and out_proj — PyTorch [out, in] layout
        "in_w": 0.05 * jax.random.normal(ks[0], (3 * D_MODEL, D_MODEL), f32),
        "in_b": 0.05 * jax.random.normal(ks[1], (3 * D_MODEL,), f32),
        "out_w": 0.05 * jax.random.normal(ks[2], (D_MODEL, D_MODEL), f32),
        "out_b": 0.05 * jax.random.normal(ks[3], (D_MODEL,), f32),
        # extra projection
        "proj_w": 0.05 * jax.random.normal(ks[4], (D_MODEL, D_MODEL), f32),
        "proj_b": 0.05 * jax.random.normal(ks[5], (D_MODEL,), f32),
        # FFN
        "ffn_w1": 0.05 * jax.random.normal(ks[6], (FF_DIM, D_MODEL), f32),
        "ffn_b1": 0.05 * jax.random.normal(ks[7], (FF_DIM,), f32),
        "ffn_w2": 0.05 * jax.random.normal(ks[8], (D_MODEL, FF_DIM), f32),
        "ffn_b2": jnp.zeros((D_MODEL,), f32),
    }


def reference_block(x, p):
    """Pure-JAX reference mirroring PyTorch semantics (eval mode)."""
    def ln(v, g, b):
        mu = jnp.mean(v, axis=-1, keepdims=True)
        var = jnp.mean((v - mu) ** 2, axis=-1, keepdims=True)
        return (v - mu) / jnp.sqrt(var + EPS) * g + b

    B, S, D = x.shape
    xn = ln(x, p["ln1_g"], p["ln1_b"])
    qkv = xn @ p["in_w"].T + p["in_b"]
    q, k, v = qkv[..., :D], qkv[..., D:2 * D], qkv[..., 2 * D:]
    q = q.reshape(B, S, N_HEAD, HEAD_DIM).transpose(0, 2, 1, 3)
    k = k.reshape(B, S, N_HEAD, HEAD_DIM).transpose(0, 2, 1, 3)
    v = v.reshape(B, S, N_HEAD, HEAD_DIM).transpose(0, 2, 1, 3)
    s = jnp.einsum("bhqd,bhkd->bhqk", q, k) / math.sqrt(HEAD_DIM)
    a = jax.nn.softmax(s, axis=-1)
    o = jnp.einsum("bhqk,bhkd->bhqd", a, v).transpose(0, 2, 1, 3).reshape(B, S, D)
    o = o @ p["out_w"].T + p["out_b"]
    proj = o @ p["proj_w"].T + p["proj_b"]
    x1 = x + proj
    xn2 = ln(x1, p["ln2_g"], p["ln2_b"])
    h1 = jnp.maximum(xn2 @ p["ffn_w1"].T + p["ffn_b1"], 0.0)
    ffn = h1 @ p["ffn_w2"].T + p["ffn_b2"]
    return x1 + ffn


if __name__ == "__main__":
    key = jax.random.PRNGKey(0)
    kx, kp = jax.random.split(key)
    x = jax.random.normal(kx, (BATCH, SEQ, D_MODEL), jnp.float32)
    params = init_params(kp)

    out = jax.block_until_ready(transformer_block(x, params))

    ref = reference_block(x, params)
    np.testing.assert_allclose(np.asarray(out), np.asarray(ref), atol=1e-4, rtol=1e-4)

    print("KERNEL_OK")
</pallas_src>

<mosaic_0001>
module attributes {stable_mosaic.version = 11 : i64} {
  func.func @kernel(%arg0: i32, %arg1: memref<1x8x32xf32, #tpu.memory_space<vmem>>, %arg2: memref<1x32xf32, #tpu.memory_space<vmem>>, %arg3: memref<1x32xf32, #tpu.memory_space<vmem>>, %arg4: memref<32x32xf32, #tpu.memory_space<vmem>>, %arg5: memref<1x32xf32, #tpu.memory_space<vmem>>, %arg6: memref<32x32xf32, #tpu.memory_space<vmem>>, %arg7: memref<1x32xf32, #tpu.memory_space<vmem>>, %arg8: memref<32x32xf32, #tpu.memory_space<vmem>>, %arg9: memref<1x32xf32, #tpu.memory_space<vmem>>, %arg10: memref<32x32xf32, #tpu.memory_space<vmem>>, %arg11: memref<32x32xf32, #tpu.memory_space<vmem>>, %arg12: memref<32x32xf32, #tpu.memory_space<vmem>>, %arg13: memref<1x32xf32, #tpu.memory_space<vmem>>, %arg14: memref<1x32xf32, #tpu.memory_space<vmem>>, %arg15: memref<1x32xf32, #tpu.memory_space<vmem>>, %arg16: memref<32x128xf32, #tpu.memory_space<vmem>>, %arg17: memref<1x128xf32, #tpu.memory_space<vmem>>, %arg18: memref<128x32xf32, #tpu.memory_space<vmem>>, %arg19: memref<1x32xf32, #tpu.memory_space<vmem>>, %arg20: memref<1x8x32xf32, #tpu.memory_space<vmem>>) attributes {dimension_semantics = [#tpu.dimension_semantics<parallel>], iteration_bounds = array<i64: 2>, scalar_prefetch = 0 : i64, scratch_operands = 0 : i64, tpu.core_type = #tpu.core_type<tc>, window_params = [{transform_indices = @transform_0, window_bounds = array<i64: 1, 8, 32>}, {pipeline_mode = #tpu.pipeline_mode<synchronous>, transform_indices = @transform_1, window_bounds = array<i64: 1, 32>}, {pipeline_mode = #tpu.pipeline_mode<synchronous>, transform_indices = @transform_2, window_bounds = array<i64: 1, 32>}, {pipeline_mode = #tpu.pipeline_mode<synchronous>, transform_indices = @transform_3, window_bounds = array<i64: 32, 32>}, {pipeline_mode = #tpu.pipeline_mode<synchronous>, transform_indices = @transform_4, window_bounds = array<i64: 1, 32>}, {pipeline_mode = #tpu.pipeline_mode<synchronous>, transform_indices = @transform_5, window_bounds = array<i64: 32, 32>}, {pipeline_mode = #tpu.pipeline_mode<synchronous>, transform_indices = @transform_6, window_bounds = array<i64: 1, 32>}, {pipeline_mode = #tpu.pipeline_mode<synchronous>, transform_indices = @transform_7, window_bounds = array<i64: 32, 32>}, {pipeline_mode = #tpu.pipeline_mode<synchronous>, transform_indices = @transform_8, window_bounds = array<i64: 1, 32>}, {pipeline_mode = #tpu.pipeline_mode<synchronous>, transform_indices = @transform_9, window_bounds = array<i64: 32, 32>}, {pipeline_mode = #tpu.pipeline_mode<synchronous>, transform_indices = @transform_10, window_bounds = array<i64: 32, 32>}, {pipeline_mode = #tpu.pipeline_mode<synchronous>, transform_indices = @transform_11, window_bounds = array<i64: 32, 32>}, {pipeline_mode = #tpu.pipeline_mode<synchronous>, transform_indices = @transform_12, window_bounds = array<i64: 1, 32>}, {pipeline_mode = #tpu.pipeline_mode<synchronous>, transform_indices = @transform_13, window_bounds = array<i64: 1, 32>}, {pipeline_mode = #tpu.pipeline_mode<synchronous>, transform_indices = @transform_14, window_bounds = array<i64: 1, 32>}, {pipeline_mode = #tpu.pipeline_mode<synchronous>, transform_indices = @transform_15, window_bounds = array<i64: 32, 128>}, {pipeline_mode = #tpu.pipeline_mode<synchronous>, transform_indices = @transform_16, window_bounds = array<i64: 1, 128>}, {pipeline_mode = #tpu.pipeline_mode<synchronous>, transform_indices = @transform_17, window_bounds = array<i64: 128, 32>}, {pipeline_mode = #tpu.pipeline_mode<synchronous>, transform_indices = @transform_18, window_bounds = array<i64: 1, 32>}, {transform_indices = @transform_19, window_bounds = array<i64: 1, 8, 32>}]} {
    %c0 = arith.constant 0 : index
    %c0_0 = arith.constant 0 : index
    %c0_1 = arith.constant 0 : index
    %0 = vector.load %arg1[%c0, %c0_0, %c0_1] : memref<1x8x32xf32, #tpu.memory_space<vmem>>, vector<1x8x32xf32>
    %1 = vector.shape_cast %0 : vector<1x8x32xf32> to vector<8x32xf32>
    %c0_2 = arith.constant 0 : index
    %c0_3 = arith.constant 0 : index
    %2 = vector.load %arg2[%c0_2, %c0_3] : memref<1x32xf32, #tpu.memory_space<vmem>>, vector<1x32xf32>
    %c0_4 = arith.constant 0 : index
    %c0_5 = arith.constant 0 : index
    %3 = vector.load %arg3[%c0_4, %c0_5] : memref<1x32xf32, #tpu.memory_space<vmem>>, vector<1x32xf32>
    %cst = arith.constant dense<0.000000e+00> : vector<8xf32>
    %4 = vector.multi_reduction <add>, %1, %cst [1] : vector<8x32xf32> to vector<8xf32>
    %5 = vector.shape_cast %4 : vector<8xf32> to vector<8x1xf32>
    %cst_6 = arith.constant 3.200000e+01 : f32
    %6 = vector.broadcast %cst_6 : f32 to vector<8x1xf32>
    %7 = arith.divf %5, %6 : vector<8x1xf32>
    %8 = vector.broadcast %7 : vector<8x1xf32> to vector<8x32xf32>
    %9 = arith.subf %1, %8 : vector<8x32xf32>
    %10 = arith.mulf %9, %9 : vector<8x32xf32>
    %cst_7 = arith.constant dense<0.000000e+00> : vector<8xf32>
    %11 = vector.multi_reduction <add>, %10, %cst_7 [1] : vector<8x32xf32> to vector<8xf32>
    %12 = vector.shape_cast %11 : vector<8xf32> to vector<8x1xf32>
    %cst_8 = arith.constant 3.200000e+01 : f32
    %13 = vector.broadcast %cst_8 : f32 to vector<8x1xf32>
    %14 = arith.divf %12, %13 : vector<8x1xf32>
    %15 = vector.broadcast %7 : vector<8x1xf32> to vector<8x32xf32>
    %16 = arith.subf %1, %15 : vector<8x32xf32>
    %cst_9 = arith.constant 9.99999974E-6 : f32
    %17 = vector.broadcast %cst_9 : f32 to vector<8x1xf32>
    %18 = arith.addf %14, %17 : vector<8x1xf32>
    %19 = math.rsqrt %18 : vector<8x1xf32>
    %20 = vector.broadcast %19 : vector<8x1xf32> to vector<8x32xf32>
    %21 = arith.mulf %16, %20 : vector<8x32xf32>
    %22 = vector.broadcast %2 : vector<1x32xf32> to vector<8x32xf32>
    %23 = arith.mulf %21, %22 : vector<8x32xf32>
    %24 = vector.broadcast %3 : vector<1x32xf32> to vector<8x32xf32>
    %25 = arith.addf %23, %24 : vector<8x32xf32>
    %c0_10 = arith.constant 0 : index
    %c0_11 = arith.constant 0 : index
    %26 = vector.load %arg4[%c0_10, %c0_11] : memref<32x32xf32, #tpu.memory_space<vmem>>, vector<32x32xf32>
    %cst_12 = arith.constant dense<0.000000e+00> : vector<8x32xf32>
    %27 = tpu.matmul %25, %26, %cst_12 {dimension_numbers = #tpu.dot_dimension_numbers<[1], [0], [0], [1], [0, 0, 1, 1], [], []>} : vector<8x32xf32>, vector<32x32xf32>, vector<8x32xf32> -> vector<8x32xf32>
    %c0_13 = arith.constant 0 : index
    %c0_14 = arith.constant 0 : index
    %28 = vector.load %arg5[%c0_13, %c0_14] : memref<1x32xf32, #tpu.memory_space<vmem>>, vector<1x32xf32>
    %29 = vector.broadcast %28 : vector<1x32xf32> to vector<8x32xf32>
    %30 = arith.addf %27, %29 : vector<8x32xf32>
    %c0_15 = arith.constant 0 : index
    %c0_16 = arith.constant 0 : index
    %31 = vector.load %arg6[%c0_15, %c0_16] : memref<32x32xf32, #tpu.memory_space<vmem>>, vector<32x32xf32>
    %cst_17 = arith.constant dense<0.000000e+00> : vector<8x32xf32>
    %32 = tpu.matmul %25, %31, %cst_17 {dimension_numbers = #tpu.dot_dimension_numbers<[1], [0], [0], [1], [0, 0, 1, 1], [], []>} : vector<8x32xf32>, vector<32x32xf32>, vector<8x32xf32> -> vector<8x32xf32>
    %c0_18 = arith.constant 0 : index
    %c0_19 = arith.constant 0 : index
    %33 = vector.load %arg7[%c0_18, %c0_19] : memref<1x32xf32, #tpu.memory_space<vmem>>, vector<1x32xf32>
    %34 = vector.broadcast %33 : vector<1x32xf32> to vector<8x32xf32>
    %35 = arith.addf %32, %34 : vector<8x32xf32>
    %c0_20 = arith.constant 0 : index
    %c0_21 = arith.constant 0 : index
    %36 = vector.load %arg8[%c0_20, %c0_21] : memref<32x32xf32, #tpu.memory_space<vmem>>, vector<32x32xf32>
    %cst_22 = arith.constant dense<0.000000e+00> : vector<8x32xf32>
    %37 = tpu.matmul %25, %36, %cst_22 {dimension_numbers = #tpu.dot_dimension_numbers<[1], [0], [0], [1], [0, 0, 1, 1], [], []>} : vector<8x32xf32>, vector<32x32xf32>, vector<8x32xf32> -> vector<8x32xf32>
    %c0_23 = arith.constant 0 : index
    %c0_24 = arith.constant 0 : index
    %38 = vector.load %arg9[%c0_23, %c0_24] : memref<1x32xf32, #tpu.memory_space<vmem>>, vector<1x32xf32>
    %39 = vector.broadcast %38 : vector<1x32xf32> to vector<8x32xf32>
    %40 = arith.addf %37, %39 : vector<8x32xf32>
    %c0_25 = arith.constant 0 : index
    %c0_26 = arith.constant 0 : index
    %41 = vector.load %arg10[%c0_25, %c0_26] : memref<32x32xf32, #tpu.memory_space<vmem>>, vector<32x32xf32>
    %42 = tpu.concatenate %35, %35, %35, %35 in 0 : vector<8x32xf32>, vector<8x32xf32>, vector<8x32xf32>, vector<8x32xf32> -> vector<32x32xf32>
    %43 = arith.mulf %42, %41 : vector<32x32xf32>
    %44 = tpu.concatenate %40, %40, %40, %40 in 0 : vector<8x32xf32>, vector<8x32xf32>, vector<8x32xf32>, vector<8x32xf32> -> vector<32x32xf32>
    %45 = arith.mulf %44, %41 : vector<32x32xf32>
    %cst_27 = arith.constant dense<0.000000e+00> : vector<8x32xf32>
    %46 = tpu.matmul %30, %43, %cst_27 {dimension_numbers = #tpu.dot_dimension_numbers<[1], [1], [0], [0], [0, 0, 1, 0], [], []>} : vector<8x32xf32>, vector<32x32xf32>, vector<8x32xf32> -> vector<8x32xf32>
    %cst_28 = arith.constant dense<0xFF800000> : vector<8xf32>
    %47 = vector.multi_reduction <maximumf>, %46, %cst_28 [1] : vector<8x32xf32> to vector<8xf32>
    %48 = vector.shape_cast %47 : vector<8xf32> to vector<8x1xf32>
    %49 = vector.broadcast %48 : vector<8x1xf32> to vector<8x32xf32>
    %50 = arith.subf %46, %49 : vector<8x32xf32>
    %51 = math.exp %50 : vector<8x32xf32>
    %c0_29 = arith.constant 0 : index
    %c0_30 = arith.constant 0 : index
    %52 = vector.load %arg11[%c0_29, %c0_30] : memref<32x32xf32, #tpu.memory_space<vmem>>, vector<32x32xf32>
    %cst_31 = arith.constant dense<0.000000e+00> : vector<8x32xf32>
    %53 = tpu.matmul %51, %52, %cst_31 {dimension_numbers = #tpu.dot_dimension_numbers<[1], [0], [0], [1], [0, 0, 1, 1], [], []>} : vector<8x32xf32>, vector<32x32xf32>, vector<8x32xf32> -> vector<8x32xf32>
    %54 = tpu.reciprocal %53 : vector<8x32xf32> -> vector<8x32xf32>
    %55 = arith.mulf %51, %54 : vector<8x32xf32>
    %cst_32 = arith.constant dense<0.000000e+00> : vector<8x32xf32>
    %56 = tpu.matmul %55, %45, %cst_32 {dimension_numbers = #tpu.dot_dimension_numbers<[1], [0], [0], [1], [0, 0, 1, 1], [], []>} : vector<8x32xf32>, vector<32x32xf32>, vector<8x32xf32> -> vector<8x32xf32>
    %c0_33 = arith.constant 0 : index
    %c0_34 = arith.constant 0 : index
    %57 = vector.load %arg12[%c0_33, %c0_34] : memref<32x32xf32, #tpu.memory_space<vmem>>, vector<32x32xf32>
    %cst_35 = arith.constant dense<0.000000e+00> : vector<8x32xf32>
    %58 = tpu.matmul %56, %57, %cst_35 {dimension_numbers = #tpu.dot_dimension_numbers<[1], [0], [0], [1], [0, 0, 1, 1], [], []>} : vector<8x32xf32>, vector<32x32xf32>, vector<8x32xf32> -> vector<8x32xf32>
    %c0_36 = arith.constant 0 : index
    %c0_37 = arith.constant 0 : index
    %59 = vector.load %arg13[%c0_36, %c0_37] : memref<1x32xf32, #tpu.memory_space<vmem>>, vector<1x32xf32>
    %60 = vector.broadcast %59 : vector<1x32xf32> to vector<8x32xf32>
    %61 = arith.addf %58, %60 : vector<8x32xf32>
    %62 = arith.addf %1, %61 : vector<8x32xf32>
    %c0_38 = arith.constant 0 : index
    %c0_39 = arith.constant 0 : index
    %63 = vector.load %arg14[%c0_38, %c0_39] : memref<1x32xf32, #tpu.memory_space<vmem>>, vector<1x32xf32>
    %c0_40 = arith.constant 0 : index
    %c0_41 = arith.constant 0 : index
    %64 = vector.load %arg15[%c0_40, %c0_41] : memref<1x32xf32, #tpu.memory_space<vmem>>, vector<1x32xf32>
    %cst_42 = arith.constant dense<0.000000e+00> : vector<8xf32>
    %65 = vector.multi_reduction <add>, %62, %cst_42 [1] : vector<8x32xf32> to vector<8xf32>
    %66 = vector.shape_cast %65 : vector<8xf32> to vector<8x1xf32>
    %cst_43 = arith.constant 3.200000e+01 : f32
    %67 = vector.broadcast %cst_43 : f32 to vector<8x1xf32>
    %68 = arith.divf %66, %67 : vector<8x1xf32>
    %69 = vector.broadcast %68 : vector<8x1xf32> to vector<8x32xf32>
    %70 = arith.subf %62, %69 : vector<8x32xf32>
    %71 = arith.mulf %70, %70 : vector<8x32xf32>
    %cst_44 = arith.constant dense<0.000000e+00> : vector<8xf32>
    %72 = vector.multi_reduction <add>, %71, %cst_44 [1] : vector<8x32xf32> to vector<8xf32>
    %73 = vector.shape_cast %72 : vector<8xf32> to vector<8x1xf32>
    %cst_45 = arith.constant 3.200000e+01 : f32
    %74 = vector.broadcast %cst_45 : f32 to vector<8x1xf32>
    %75 = arith.divf %73, %74 : vector<8x1xf32>
    %76 = vector.broadcast %68 : vector<8x1xf32> to vector<8x32xf32>
    %77 = arith.subf %62, %76 : vector<8x32xf32>
    %cst_46 = arith.constant 9.99999974E-6 : f32
    %78 = vector.broadcast %cst_46 : f32 to vector<8x1xf32>
    %79 = arith.addf %75, %78 : vector<8x1xf32>
    %80 = math.rsqrt %79 : vector<8x1xf32>
    %81 = vector.broadcast %80 : vector<8x1xf32> to vector<8x32xf32>
    %82 = arith.mulf %77, %81 : vector<8x32xf32>
    %83 = vector.broadcast %63 : vector<1x32xf32> to vector<8x32xf32>
    %84 = arith.mulf %82, %83 : vector<8x32xf32>
    %85 = vector.broadcast %64 : vector<1x32xf32> to vector<8x32xf32>
    %86 = arith.addf %84, %85 : vector<8x32xf32>
    %c0_47 = arith.constant 0 : index
    %c0_48 = arith.constant 0 : index
    %87 = vector.load %arg16[%c0_47, %c0_48] : memref<32x128xf32, #tpu.memory_space<vmem>>, vector<32x128xf32>
    %cst_49 = arith.constant dense<0.000000e+00> : vector<8x128xf32>
    %88 = tpu.matmul %86, %87, %cst_49 {dimension_numbers = #tpu.dot_dimension_numbers<[1], [0], [0], [1], [0, 0, 1, 1], [], []>} : vector<8x32xf32>, vector<32x128xf32>, vector<8x128xf32> -> vector<8x128xf32>
    %c0_50 = arith.constant 0 : index
    %c0_51 = arith.constant 0 : index
    %89 = vector.load %arg17[%c0_50, %c0_51] : memref<1x128xf32, #tpu.memory_space<vmem>>, vector<1x128xf32>
    %90 = vector.broadcast %89 : vector<1x128xf32> to vector<8x128xf32>
    %91 = arith.addf %88, %90 : vector<8x128xf32>
    %cst_52 = arith.constant 0.000000e+00 : f32
    %92 = vector.broadcast %cst_52 : f32 to vector<8x128xf32>
    %93 = arith.maximumf %91, %92 : vector<8x128xf32>
    %c0_53 = arith.constant 0 : index
    %c0_54 = arith.constant 0 : index
    %94 = vector.load %arg18[%c0_53, %c0_54] : memref<128x32xf32, #tpu.memory_space<vmem>>, vector<128x32xf32>
    %cst_55 = arith.constant dense<0.000000e+00> : vector<8x32xf32>
    %95 = tpu.matmul %93, %94, %cst_55 {dimension_numbers = #tpu.dot_dimension_numbers<[1], [0], [0], [1], [0, 0, 1, 1], [], []>} : vector<8x128xf32>, vector<128x32xf32>, vector<8x32xf32> -> vector<8x32xf32>
    %c0_56 = arith.constant 0 : index
    %c0_57 = arith.constant 0 : index
    %96 = vector.load %arg19[%c0_56, %c0_57] : memref<1x32xf32, #tpu.memory_space<vmem>>, vector<1x32xf32>
    %97 = vector.broadcast %96 : vector<1x32xf32> to vector<8x32xf32>
    %98 = arith.addf %95, %97 : vector<8x32xf32>
    %99 = arith.addf %62, %98 : vector<8x32xf32>
    %c0_58 = arith.constant 0 : index
    %c0_59 = arith.constant 0 : index
    %c0_60 = arith.constant 0 : index
    %100 = vector.load %arg20[%c0_58, %c0_59, %c0_60] : memref<1x8x32xf32, #tpu.memory_space<vmem>>, vector<1x8x32xf32>
    %101 = vector.shape_cast %100 : vector<1x8x32xf32> to vector<8x32xf32>
    %102 = vector.shape_cast %99 : vector<8x32xf32> to vector<1x8x32xf32>
    tpu.vector_store %arg20[%c0_58, %c0_59, %c0_60], %102 {strides = array<i32>} : memref<1x8x32xf32, #tpu.memory_space<vmem>>, vector<1x8x32xf32>,
    return
  }
  func.func @transform_0(%arg0: i32) -> (i32, i32, i32) {
    %c0_i32 = arith.constant 0 : i32
    %c0_i32_0 = arith.constant 0 : i32
    %c0_i32_1 = arith.constant 0 : i32
    return %arg0, %c0_i32, %c0_i32_0 : i32, i32, i32
  }
  func.func @transform_1(%arg0: i32) -> (i32, i32) {
    %c0_i32 = arith.constant 0 : i32
    %c0_i32_0 = arith.constant 0 : i32
    %c0_i32_1 = arith.constant 0 : i32
    return %c0_i32, %c0_i32_0 : i32, i32
  }
  func.func @transform_2(%arg0: i32) -> (i32, i32) {
    %c0_i32 = arith.constant 0 : i32
    %c0_i32_0 = arith.constant 0 : i32
    %c0_i32_1 = arith.constant 0 : i32
    return %c0_i32, %c0_i32_0 : i32, i32
  }
  func.func @transform_3(%arg0: i32) -> (i32, i32) {
    %c0_i32 = arith.constant 0 : i32
    %c0_i32_0 = arith.constant 0 : i32
    %c0_i32_1 = arith.constant 0 : i32
    return %c0_i32, %c0_i32_0 : i32, i32
  }
  func.func @transform_4(%arg0: i32) -> (i32, i32) {
    %c0_i32 = arith.constant 0 : i32
    %c0_i32_0 = arith.constant 0 : i32
    %c0_i32_1 = arith.constant 0 : i32
    return %c0_i32, %c0_i32_0 : i32, i32
  }
  func.func @transform_5(%arg0: i32) -> (i32, i32) {
    %c0_i32 = arith.constant 0 : i32
    %c0_i32_0 = arith.constant 0 : i32
    %c0_i32_1 = arith.constant 0 : i32
    return %c0_i32, %c0_i32_0 : i32, i32
  }
  func.func @transform_6(%arg0: i32) -> (i32, i32) {
    %c0_i32 = arith.constant 0 : i32
    %c0_i32_0 = arith.constant 0 : i32
    %c0_i32_1 = arith.constant 0 : i32
    return %c0_i32, %c0_i32_0 : i32, i32
  }
  func.func @transform_7(%arg0: i32) -> (i32, i32) {
    %c0_i32 = arith.constant 0 : i32
    %c0_i32_0 = arith.constant 0 : i32
    %c0_i32_1 = arith.constant 0 : i32
    return %c0_i32, %c0_i32_0 : i32, i32
  }
  func.func @transform_8(%arg0: i32) -> (i32, i32) {
    %c0_i32 = arith.constant 0 : i32
    %c0_i32_0 = arith.constant 0 : i32
    %c0_i32_1 = arith.constant 0 : i32
    return %c0_i32, %c0_i32_0 : i32, i32
  }
  func.func @transform_9(%arg0: i32) -> (i32, i32) {
    %c0_i32 = arith.constant 0 : i32
    %c0_i32_0 = arith.constant 0 : i32
    %c0_i32_1 = arith.constant 0 : i32
    return %c0_i32, %c0_i32_0 : i32, i32
  }
  func.func @transform_10(%arg0: i32) -> (i32, i32) {
    %c0_i32 = arith.constant 0 : i32
    %c0_i32_0 = arith.constant 0 : i32
    %c0_i32_1 = arith.constant 0 : i32
    return %c0_i32, %c0_i32_0 : i32, i32
  }
  func.func @transform_11(%arg0: i32) -> (i32, i32) {
    %c0_i32 = arith.constant 0 : i32
    %c0_i32_0 = arith.constant 0 : i32
    %c0_i32_1 = arith.constant 0 : i32
    return %c0_i32, %c0_i32_0 : i32, i32
  }
  func.func @transform_12(%arg0: i32) -> (i32, i32) {
    %c0_i32 = arith.constant 0 : i32
    %c0_i32_0 = arith.constant 0 : i32
    %c0_i32_1 = arith.constant 0 : i32
    return %c0_i32, %c0_i32_0 : i32, i32
  }
  func.func @transform_13(%arg0: i32) -> (i32, i32) {
    %c0_i32 = arith.constant 0 : i32
    %c0_i32_0 = arith.constant 0 : i32
    %c0_i32_1 = arith.constant 0 : i32
    return %c0_i32, %c0_i32_0 : i32, i32
  }
  func.func @transform_14(%arg0: i32) -> (i32, i32) {
    %c0_i32 = arith.constant 0 : i32
    %c0_i32_0 = arith.constant 0 : i32
    %c0_i32_1 = arith.constant 0 : i32
    return %c0_i32, %c0_i32_0 : i32, i32
  }
  func.func @transform_15(%arg0: i32) -> (i32, i32) {
    %c0_i32 = arith.constant 0 : i32
    %c0_i32_0 = arith.constant 0 : i32
    %c0_i32_1 = arith.constant 0 : i32
    return %c0_i32, %c0_i32_0 : i32, i32
  }
  func.func @transform_16(%arg0: i32) -> (i32, i32) {
    %c0_i32 = arith.constant 0 : i32
    %c0_i32_0 = arith.constant 0 : i32
    %c0_i32_1 = arith.constant 0 : i32
    return %c0_i32, %c0_i32_0 : i32, i32
  }
  func.func @transform_17(%arg0: i32) -> (i32, i32) {
    %c0_i32 = arith.constant 0 : i32
    %c0_i32_0 = arith.constant 0 : i32
    %c0_i32_1 = arith.constant 0 : i32
    return %c0_i32, %c0_i32_0 : i32, i32
  }
  func.func @transform_18(%arg0: i32) -> (i32, i32) {
    %c0_i32 = arith.constant 0 : i32
    %c0_i32_0 = arith.constant 0 : i32
    %c0_i32_1 = arith.constant 0 : i32
    return %c0_i32, %c0_i32_0 : i32, i32
  }
  func.func @transform_19(%arg0: i32) -> (i32, i32, i32) {
    %c0_i32 = arith.constant 0 : i32
    %c0_i32_0 = arith.constant 0 : i32
    %c0_i32_1 = arith.constant 0 : i32
    return %arg0, %c0_i32, %c0_i32_0 : i32, i32, i32
  }
}

</mosaic_0001>

<bundles_post_ra>
// kernel: tpu_custom_call.1
= control target key start
LH: loop header
LB: loop body
LE: loop exit
PB: predicated region body
PF: predicated region fallthrough
CT: control target
= control target key end

     0   :  { %s2533_s0 = inlined_call_operand.hbm [shape: f32[2,8,32], index: 0, kind: input, shape index: {}]   ;;  %s2534_s1 = inlined_call_operand.vmem [shape: f32[1,32], index: 1, kind: input, shape index: {}]   ;;  %s2535_s2 = inlined_call_operand.vmem [shape: f32[1,32], index: 2, kind: input, shape index: {}]   ;;  %s2536_s3 = inlined_call_operand.vmem [shape: f32[32,32], index: 3, kind: input, shape index: {}]   ;;  %s2537_s4 = inlined_call_operand.vmem [shape: f32[1,32], index: 4, kind: input, shape index: {}]   ;;  %s2538_s5 = inlined_call_operand.vmem [shape: f32[32,32], index: 5, kind: input, shape index: {}]   ;;  %s2539_s6 = inlined_call_operand.vmem [shape: f32[1,32], index: 6, kind: input, shape index: {}]   ;;  %s2540_s7 = inlined_call_operand.vmem [shape: f32[32,32], index: 7, kind: input, shape index: {}]   ;;  %s2541_s8 = inlined_call_operand.vmem [shape: f32[1,32], index: 8, kind: input, shape index: {}]   ;;  %s2542_s9 = inlined_call_operand.vmem [shape: f32[32,32], index: 9, kind: input, shape index: {}]   ;;  %s2543_s10 = inlined_call_operand.vmem [shape: f32[32,32], index: 10, kind: input, shape index: {}]   ;;  %s2544_s11 = inlined_call_operand.hbm [shape: f32[32,32], index: 11, kind: input, shape index: {}]   ;;  %s2545_s12 = inlined_call_operand.vmem [shape: f32[1,32], index: 12, kind: input, shape index: {}]   ;;  %s2546_s13 = inlined_call_operand.vmem [shape: f32[1,32], index: 13, kind: input, shape index: {}]   ;;  %s2547_s14 = inlined_call_operand.vmem [shape: f32[1,32], index: 14, kind: input, shape index: {}]   ;;  %s2548_s15 = inlined_call_operand.hbm [shape: f32[32,128], index: 15, kind: input, shape index: {}]   ;;  %s2549_s16 = inlined_call_operand.vmem [shape: f32[1,128], index: 16, kind: input, shape index: {}]   ;;  %s2550_s17 = inlined_call_operand.vmem [shape: f32[128,32], index: 17, kind: input, shape index: {}]   ;;  %s2551_s18 = inlined_call_operand.vmem [shape: f32[1,32], index: 18, kind: input, shape index: {}]   ;;  %s2552_s19 = inlined_call_operand.hbm [shape: f32[2,8,32], index: 19, kind: output, shape index: {}]  }
   0x1   :  { %2568 = sst [smem:[#allocation19_spill]] %s2533_s0 }
   0x2   :  { %2569 = sst [smem:[#allocation20_spill]] %s2534_s1 }
   0x3   :  { %2570 = sst [smem:[#allocation21_spill]] %s2535_s2 }
   0x4   :  { %2571 = sst [smem:[#allocation22_spill]] %s2536_s3 }
   0x5   :  { %2572 = sst [smem:[#allocation23_spill]] %s2544_s11 }
   0x6   :  { %2573 = sst [smem:[#allocation24_spill]] %s2548_s15 }
   0x7   :  { %2574 = sst [smem:[#allocation25_spill]] %s2551_s18 }
   0x8   :  { %2575 = sst [smem:[#allocation26_spill]] %s2552_s19 }
   0x9   :  { %24 = vsyncpa [#allocation3], 0 }
   0xa   :  { %26 = vsyncpa [#allocation3 + $0x1], 0 }
   0xb   :  { %27 = vsyncpa [#allocation6], 0 }
   0xc   :  { %28 = vsyncpa [#allocation4], 0 }
   0xd   :  { %30 = vsyncpa [#allocation4 + $0x1], 0  ;;  %s2132_s0 = smov 0   ;;  %s2134_s30 = smov 0  }
   0xe   :  { %s2136_s20 = smov 0   ;;  %s2138_s21 = smov 0  }
   0xf LB: > { %2576 = sst [smem:[#allocation12_spill]] %s2010_s0  ;;  %s2153_s1 = sadd.s32 4294967295, %s2022_s21   ;;  %s2022_s21 = sphi %s2138_s21, %s2609_s21   ;;  %s2018_s20 = sphi %s2136_s20, %s2614_s20   ;;  %s2014_s30 = sphi %s2134_s30, %s2613_s30   ;;  %s2010_s0 = sphi %s2132_s0, %s2612_s0  }
  0x10   : > { %2577 = sst [smem:[#allocation13_spill]] %s2018_s20  ;;  %s1577_s22 = sadd.s32 4294967294, %s2022_s21  }
  0x11   : > { %2578 = sst [smem:[#allocation14_spill]] %s2022_s21  ;;  %p56_p0 = scmp.ne.s32.totalorder %s2014_s30, %s2010_s0 }
  0x12   : > { %p2557_p1 = scmp.eq.s32.totalorder %s2153_s1, 0  ;;  %p464_p3 = scmp.eq.s32.totalorder %s1577_s22, 1 }
  0x13   : > { %p1578_p5 = scmp.ge.s32.totalorder %s2022_s21, 1  ;;  %p471_p7 = scmp.lt.s32.totalorder %s2022_s21, 3 }
  0x14   : > { %p2162_p4 = por %p2557_p1, %p56_p0  ;;  %p2167_p6 = por %p464_p3, %p56_p0 }
  0x15   : > { %p2172_p8 = pnand %p1578_p5, %p471_p7  ;;  %s2024_s25 = smov [#allocation5]  }
  0x16   : > { %s2579_s2 = scalar_select %p2162_p4, 1, 0 }
  0x17   : > { %s2580_s23 = scalar_select %p2167_p6, 1, 0 }
  0x18   : > { %s2582_s24 = scalar_select %p2172_p8, 1, 0 }
  0x19   : > { %2581 = sst [smem:[#allocation15_spill]] %s2580_s23  ;;  %s513_s3 = sshll.u32 %s2024_s25, 4  ;;  %s514_s3 = int_to_ptr.vmem [resolvable:$true] %s513_s3 }
  0x1a   : > { %p1807_p9 = pneg %p2172_p8  ;;  %s2025_s27 = smov [#allocation7]  }
  0x1b   : > { %s535_s28 = sshll.u32 %s2025_s27, 4  ;;  %s1885_s29 = scalar_lea.vmem %s514_s3, 512  ;;  %s536_s28 = int_to_ptr.vmem [resolvable:$true] %s535_s28 }
  0x1c   : > { %p2181_p11 = pnand %p1807_p9, %p2557_p1  ;;  %p1886_p13 = scmp.ne.s32.totalorder %s514_s3, %s1885_s29 }
  0x1d   : > { %p1893_p5 = scmp.lt.s32.totalorder %s514_s3, %s514_s3  ;;  %p1894_p7 = scmp.lt.s32.totalorder %s1885_s29, %s1885_s29 }
  0x1e   : > { %p1876_p12 = pneg %p2181_p11 }
  0x1f   : > { %p1895_p10 = por %p1894_p7, %p1893_p5 }
  0x20   : > { %p1888_p0 = pnand %p1886_p13, %p1876_p12 }
  0x22   : > { %p1889_p3 = pneg %p1888_p0 }
  0x24   : > { %p1896_p9 = pnand %p1895_p10, %p1889_p3 }
  0x26   : > { %1899 = shalt.err (!%p1896_p9)
}
  0x27   : > { %s2026_s22 = smov 128   ;;  %s2027_s25 = smov 8  }
  0x28   : > { %s2584_s11 = sld [smem:[#allocation23_spill]]  ;;  %s1911_s0 = scalar_lea.vmem %s536_s28, 512 }
  0x29   : > { %p1912_p1 = scmp.ne.s32.totalorder %s536_s28, %s1911_s0  ;;  %p1919_p2 = scmp.lt.s32.totalorder %s536_s28, %s536_s28 }
  0x2a   : > { %p1920_p6 = scmp.lt.s32.totalorder %s1911_s0, %s1911_s0 }
  0x2b   : > { %p1914_p13 = pnand %p1912_p1, %p1876_p12 }
  0x2c   : > { %p1921_p5 = por %p1920_p6, %p1919_p2 }
  0x2d   : > { %p1915_p0 = pneg %p1914_p13 }
  0x2e   : > { %1810 = dma.hbm_to_vmem [thread:$0]  (!%p2181_p11), %s2584_s11, 512, %s514_s3, [#allocation6], %s2026_s22, %s2026_s22, %s2027_s25  }
  0x2f   : > { %p1922_p10 = pnand %p1921_p5, %p1915_p0 }
  0x31   : > { %1925 = shalt.err (!%p1922_p10)
}
  0x32   : > { %s2585_s15 = sld [smem:[#allocation24_spill]]  ;;  %s2204_s0 = sadd.s32 1, %s2022_s21  }
  0x33   : > { %2586 = sst [smem:[#allocation16_spill]] %s2204_s0  ;;  %s43_s23 = sadd.s32 1, %s2018_s20 }
  0x34   : > { %s40_s3 = ssub.s32 %s2022_s21, %s2204_s0  ;;  %p50_p1 = scmp.ne.s32.totalorder %s2018_s20, %s2014_s30 }
  0x35   : > { %p41_p2 = scmp.eq.s32.totalorder %s40_s3, 0  ;;  %p51_p6 = scmp.eq.s32.totalorder %s2022_s21, 0 }
  0x36   : > { %p2587_p12 = scmp.eq.s32.totalorder %s2153_s1, 1  ;;  %p1824_p7 = scmp.lt.s32.totalorder %s2022_s21, 2 }
  0x37   : > { %s2220_s26 = scalar_select %p41_p2, %s2018_s20, %s43_s23  }
  0x38   : > { %1813 = dma.hbm_to_vmem [thread:$0]  (!%p2181_p11), %s2585_s15, 512, %s536_s28, [#allocation6], %s2026_s22, %s2026_s22, %s2027_s25  }
  0x39   : > { %p2214_p3 = por %p2587_p12, %p50_p1  ;;  %2590 = sst [smem:[#allocation18_spill]] %s2220_s26 }
  0x3a   : > { %p52_p9 = por %p51_p6, %p50_p1  ;;  %s558_s27 = sand.u32 1, %s2018_s20  }
  0x3b   : > { %s2588_s19 = scalar_select %p2214_p3, 1, 0 }
  0x3c   : > { %s1582_s29 = sshll.u32 %s558_s27, 3  ;;  %s1583_s28 = sshll.u32 %s2022_s21, 7 }
  0x3d   : > { %2589 = sst [smem:[#allocation17_spill]] %s2588_s19  ;;  %s562_s3 = scalar_lea.vmem [#allocation2], %s1582_s29 }
  0x3e   : > { %s2591_s11 = sld [smem:[#allocation19_spill]]  ;;  %s569_s0 = sshll.u32 %s562_s3, 4  ;;  %s570_s0 = int_to_ptr.vmem [resolvable:$true] %s569_s0 }
  0x3f   : > { %p2229_p11 = pnand %p1824_p7, %p52_p9  ;;  %s559_s23 = scalar_lea.sflag [#allocation3], %s558_s27 }
  0x41   : > { %p1928_p0 = pneg %p2229_p11 }
  0x44   : > { %s2227_s15 = scalar_lea.hbm %s2591_s11, %s1583_s28  ;;  %s1931_s25 = scalar_lea.hbm %s2591_s11, 256 }
  0x45   : > { %s1926_s26 = scalar_lea.hbm %s2227_s15, 128  ;;  %p1932_p1 = scmp.lt.s32.totalorder %s2227_s15, %s2591_s11 }
  0x46   : > { %p1927_p13 = scmp.ne.s32.totalorder %s2227_s15, %s1926_s26  ;;  %p1933_p2 = scmp.lt.s32.totalorder %s1931_s25, %s1926_s26 }
  0x48   : > { %p1929_p5 = pnand %p1928_p0, %p1927_p13  ;;  %p1934_p6 = por %p1933_p2, %p1932_p1 }
  0x4a   : > { %p1930_p10 = pneg %p1929_p5 }
  0x4c   : > { %p1935_p12 = pnand %p1934_p6, %p1930_p10 }
  0x4e   : > { %1938 = shalt.err (!%p1935_p12)
}
  0x4f   : > { %s1939_s3 = scalar_lea.vmem %s570_s0, 128  ;;  %s2028_s27 = smov [#allocation2]  }
  0x50   : > { %p1940_p7 = scmp.ne.s32.totalorder %s570_s0, %s1939_s3  ;;  %s1944_s21 = sshll.u32 %s2028_s27, 4  ;;  %s1945_s21 = int_to_ptr.vmem [resolvable:$false] %s1944_s21 }
  0x51   : > { %s1946_s19 = scalar_lea.vmem %s1945_s21, 256  ;;  %p1947_p13 = scmp.lt.s32.totalorder %s570_s0, %s1945_s21 }
  0x52   : > { %p1942_p9 = pnand %p1940_p7, %p1928_p0  ;;  %p1948_p5 = scmp.lt.s32.totalorder %s1946_s19, %s1939_s3 }
  0x54   : > { %p1943_p3 = pneg %p1942_p9  ;;  %p1949_p4 = por %p1948_p5, %p1947_p13 }
  0x56   : > { %p1950_p8 = pnand %p1949_p4, %p1943_p3 }
  0x58   : > { %1953 = shalt.err (!%p1950_p8)
}
  0x59   : > { %1817 = dma.hbm_to_vmem [thread:$0]  (!%p2229_p11), %s2227_s15, 128, %s570_s0, %s559_s23  }
  0x5a   : > { %p2593_p10 = scmp.ne.s32.totalorder %s2582_s24, 0 }
  0x5b   : > { %s2250_s20 = sand.u32 (!%p2593_p10), 1, %s2014_s30   ;;  %p2594_p4 = scmp.ne.s32.totalorder (!%p2593_p10), %s2579_s2, 0 }
  0x5c   : > { %578 = sbr.rel (%p2593_p10) target bundleno = 2294 (0x8f6), region = 96  ;;  %s1585_s26 = sshll.u32 (!%p2593_p10), %s2250_s20, 3 }
  0x5d   : > { %s581_s21 = scalar_lea.sflag (!%p2593_p10), [#allocation3], %s2250_s20  ;;  %s584_s19 = scalar_lea.vmem (!%p2593_p10), [#allocation2], %s1585_s26 }
  0x61   : > { %1997 = dma.done.wait (%p2594_p4), %s581_s21, 128  }
  0x62   : > { %1999 = vsyncadd (%p2594_p4), %s581_s21, 4294967168  ;;  %p2595_p8 = scmp.eq.s32.totalorder %s2153_s1, 0 }
  0x64   : > { %2001 = dma.done.wait (%p2595_p8), [#allocation6], 1024   ;;  %p2596_p3 = pmov %p2595_p8 }
  0x65   : > { %vm650_vm0 = vcmask 261120   ;;  %v2264_v0 = vld [vmem:[%s584_s19] sm:$0xff]  ;;  %s2597_s2 = sld [smem:[#allocation22_spill]]  ;;  %v2029_v8 = vmov 0.0   ;;  %vm2030_vm1 = vmmov 0   ;;  %v766_v21 = vld [vmem:[%s2538_s5 + $0x18] sm:$0xff] }
  0x66   : > { %2003 = vsyncadd (%p2596_p3), [#allocation6], 4294966272  ;;  %v651_v1 = vsel %vm650_vm0, %v2264_v0, 0.0  ;;  %1672 = vmatprep.subr.mxu0 %v2029_v8  ;;  %1680 = vmatprep.mubr.msk.f32.mxu0 %vm2030_vm1, %v2029_v8  ;;  %s2598_s27 = sld [smem:[#allocation20_spill]]  ;;  %v765_v22 = vld [vmem:[%s2538_s5 + $0x10] sm:$0xff]  ;;  %v764_v23 = vld [vmem:[%s2538_s5 + $0x8] sm:$0xff] }
  0x67   : > { %652 = vadd.xlane.f32.xlu0 %v651_v1  ;;  %1705 = vmatprep.subr.mxu1 %v2029_v8  ;;  %s2599_s15 = sld [smem:[#allocation21_spill]]  ;;  %v763_v24 = vld [vmem:[%s2538_s5] sm:$0xff]  ;;  %v847_v25 = vld [vmem:[%s2540_s7 + $0x18] sm:$0xff]  ;;  %v846_v26 = vld [vmem:[%s2540_s7 + $0x10] sm:$0xff]  ;;  %s1612_s28 = sshll.u32 %s2153_s1, 7 }
  0x68   : > { %1713 = vmatprep.mubr.msk.f32.mxu1 %vm2030_vm1, %v2029_v8  ;;  %v845_v27 = vld [vmem:[%s2540_s7 + $0x8] sm:$0xff]  ;;  %v844_v28 = vld [vmem:[%s2540_s7] sm:$0xff]  ;;  %v928_v33 = vld [vmem:[%s2542_s9 + $0x18] sm:$0xff]  ;;  %s2600_s18 = sld [smem:[#allocation17_spill]]  ;;  %s646_s22 = scalar_lea.vmem [#allocation8], %s1585_s26 }
  0x69   : > { %v1593_v31 = vld [vmem:[%s2539_s6] ss:$0 sm:$0xff]  ;;  %v927_v37 = vld [vmem:[%s2542_s9 + $0x10] sm:$0xff]  ;;  %v926_v40 = vld [vmem:[%s2542_s9 + $0x8] sm:$0xff]  ;;  %s2601_s23 = sld [smem:[#allocation25_spill]]  ;;  %s1488_s25 = sshll.u32 %s646_s22, 4  ;;  %s1489_s25 = int_to_ptr.vmem [resolvable:$true] %s1488_s25 }
  0x6a   : > { %v1595_v38 = vld [vmem:[%s2541_s8] ss:$0 sm:$0xff]  ;;  %v1031_v56 = vld [vmem:[%s2543_s10 + $0x18] sm:$0xff]  ;;  %v1030_v57 = vld [vmem:[%s2543_s10 + $0x10] sm:$0xff]  ;;  %s1475_s19 = scalar_lea.sflag [#allocation4], %s2250_s20  ;;  %s2031_s1 = smov [#allocation8]  }
  0x6b   : > { %v682_v7 = vld [vmem:[%s2597_s2 + $0x18] sm:$0xff]  ;;  %v681_v9 = vld [vmem:[%s2597_s2 + $0x10] sm:$0xff]  ;;  %v680_v10 = vld [vmem:[%s2597_s2 + $0x8] sm:$0xff]  ;;  %s1958_s26 = sshll.u32 %s2031_s1, 4  ;;  %s1959_s26 = int_to_ptr.vmem [resolvable:$false] %s1958_s26 }
  0x6c   : > { %1673 = vmatpush3.msra.mxu0 %v682_v7  ;;  %v679_v11 = vld [vmem:[%s2597_s2] sm:$0xff]  ;;  %v1029_v58 = vld [vmem:[%s2543_s10 + $0x8] sm:$0xff]  ;;  %s1960_s24 = scalar_lea.vmem %s1959_s26, 256  ;;  %p1961_p6 = scmp.lt.s32.totalorder %s1489_s25, %s1959_s26 }
  0x6d   : > { %1674 = vmatprep.subr.mxu0 %v2029_v8  ;;  %v1589_v16 = vld [vmem:[%s2598_s27] ss:$0 sm:$0xff]  ;;  %v1183_v1 = vld [vmem:[#allocation5 + $0x18] sm:$0xff]  ;;  %s2602_s27 = sld [smem:[#allocation26_spill]] }
  0x6e   : > { %1675 = vmatpush3.msra.mxu0 %v681_v9  ;;  %v1590_v18 = vld [vmem:[%s2599_s15] ss:$0 sm:$0xff]  ;;  %v1180_v9 = vld [vmem:[#allocation5] sm:$0xff]  ;;  %s1954_s15 = scalar_lea.vmem %s1489_s25, 128  ;;  %p2603_p0 = scmp.ne.s32.totalorder %s2600_s18, 0 }
  0x6f   : > { %1676 = vmatprep.subr.mxu0 %v2029_v8  ;;  %v925_v45 = vld [vmem:[%s2542_s9] sm:$0xff]  ;;  %p1955_p11 = scmp.ne.s32.totalorder %s1489_s25, %s1954_s15  ;;  %p1962_p12 = scmp.lt.s32.totalorder %s1960_s24, %s1954_s15 }
  0x70   : > { %1677 = vmatpush3.msra.mxu0 %v680_v10  ;;  %v1591_v50 = vld [vmem:[%s2537_s4] ss:$0 sm:$0xff] }
  0x71   : > { %1678 = vmatprep.subr.mxu0 %v2029_v8  ;;  %v1028_v59 = vld [vmem:[%s2543_s10] sm:$0xff]  ;;  %p1956_p1 = pnand %p1955_p11, %p2603_p0  ;;  %p1963_p7 = por %p1962_p12, %p1961_p6 }
  0x72   : > { %1679 = vmatpush3.msra.mxu0 %v679_v11 }
  0x73   : > { %1683 = vmatprep.subr.mxu0 %v2029_v8  ;;  %s1486_s21 = scalar_lea.hbm %s2602_s27, %s1612_s28  ;;  %p1957_p2 = pneg %p1956_p1 }
  0x75   : > { %p1964_p9 = pnand %p1963_p7, %p1957_p2 }
  0xf0   : > { %v653_v2 = vpop.xlane.xlu0 %652 }
  0xf1   : > { %v655_v3 = vmul.f32 0.03125, %v653_v2  ;;  %v1182_v2 = vld [vmem:[#allocation5 + $0x10] sm:$0xff] }
  0xf3   : > { %v656_v4 = vsub.f32 %v2264_v0, %v655_v3  ;;  %v1181_v3 = vld [vmem:[#allocation5 + $0x8] sm:$0xff] }
  0xf5   : > { %v657_v5 = vmul.f32 %v656_v4, %v656_v4 }
  0xf7   : > { %v658_v6 = vsel %vm650_vm0, %v657_v5, 0.0 }
  0xf8   : > { %659 = vadd.xlane.f32.xlu0 %v658_v6 }
 0x181   : > { %v660_v12 = vpop.xlane.xlu0 %659 }
 0x182   : > { %v661_v13 = vmul.f32 0.03125, %v660_v12  ;;  %v1604_v12 = vld [vmem:[%s2545_s12] ss:$0 sm:$0xff] }
 0x184   : > { %v662_v14 = vadd.f32 1e-05, %v661_v13 }
 0x186   : > { %1866 = vrsqrt.f32 %v662_v14 }
 0x193   : > { %v1867_v15 = vpop.eup %1866 }
 0x194   : > { %v664_v17 = vmul.f32 %v1867_v15, %v656_v4 }
 0x196   : > { %v671_v19 = vmul.f32 %v1589_v16, %v664_v17 }
 0x198   : > { %v678_v20 = vadd.f32 %v1590_v18, %v671_v19 }
 0x19a   : > { %1681 = vmatmul.mubr.msk.f32.vlgmr.msra.gmra.mxu0 %vm650_vm0, %v678_v20 }
 0x19b   : > { %1684 = vmatpush3.msra.mxu0 %v766_v21  ;;  %1691 = vmatprep.mubr.msk.f32.mxu0 %vm2030_vm1, %v2029_v8 }
 0x19c   : > { %1685 = vmatprep.subr.mxu0 %v2029_v8 }
 0x19d   : > { %1686 = vmatpush3.msra.mxu0 %v765_v22 }
 0x19e   : > { %1687 = vmatprep.subr.mxu0 %v2029_v8 }
 0x19f   : > { %1688 = vmatpush3.msra.mxu0 %v764_v23  ;;  %v1297_v23 = vld [vmem:[#allocation7 + $0x18] sm:$0xff] }
 0x1a0   : > { %1689 = vmatprep.subr.mxu0 %v2029_v8 }
 0x1a1   : > { %1690 = vmatpush3.msra.mxu0 %v763_v24  ;;  %v1296_v24 = vld [vmem:[#allocation7 + $0x10] sm:$0xff] }
 0x1a2   : > { %1692 = vmatmul.mubr.msk.f32.vlgmr.msra.gmra.mxu0 %vm650_vm0, %v678_v20  ;;  %1694 = vmatprep.subr.mxu0 %v2029_v8 }
 0x1a3   : > { %1695 = vmatpush3.msra.mxu0 %v847_v25  ;;  %1702 = vmatprep.mubr.msk.f32.mxu0 %vm2030_vm1, %v2029_v8  ;;  %v1295_v25 = vld [vmem:[#allocation7 + $0x8] sm:$0xff] }
 0x1a4   : > { %1696 = vmatprep.subr.mxu0 %v2029_v8 }
 0x1a5   : > { %1697 = vmatpush3.msra.mxu0 %v846_v26  ;;  %v1394_v26 = vld [vmem:[%s2550_s17 + $0x78] sm:$0xff] }
 0x1a6   : > { %1698 = vmatprep.subr.mxu0 %v2029_v8 }
 0x1a7   : > { %1699 = vmatpush3.msra.mxu0 %v845_v27  ;;  %v1393_v27 = vld [vmem:[%s2550_s17 + $0x70] sm:$0xff] }
 0x1a8   : > { %1700 = vmatprep.subr.mxu0 %v2029_v8 }
 0x1a9   : > { %1701 = vmatpush3.msra.mxu0 %v844_v28  ;;  %v1392_v28 = vld [vmem:[%s2550_s17 + $0x68] sm:$0xff] }
 0x1aa   : > { %1703 = vmatmul.mubr.msk.f32.vlgmr.msra.gmra.mxu0 %vm650_vm0, %v678_v20  ;;  %1716 = vmatprep.subr.mxu0 %v2029_v8 }
 0x1ab   : > { %1724 = vmatprep.mubr.msk.f32.mxu0 %vm2030_vm1, %v2029_v8  ;;  %1717 = vmatpush3.msra.mxu0 %v1031_v56  ;;  %v1610_v56 = vld [vmem:[%s2601_s23] ss:$0 sm:$0xff] }
 0x1ac   : > { %1718 = vmatprep.subr.mxu0 %v2029_v8 }
 0x1ad   : > { %1719 = vmatpush3.msra.mxu0 %v1030_v57 }
 0x1ae   : > { %1720 = vmatprep.subr.mxu0 %v2029_v8 }
 0x1af   : > { %1721 = vmatpush3.msra.mxu0 %v1029_v58 }
 0x1b0   : > { %1722 = vmatprep.subr.mxu0 %v2029_v8 }
 0x1b1   : > { %1723 = vmatpush3.msra.mxu0 %v1028_v59 }
 0x1b2   : > { %1727 = vmatprep.subr.mxu0 %v2029_v8 }
 0x25a   : > { %v759_v29 = vpop.f32.mrf.mxu0 }
 0x25b   : > { %v760_v52 = vadd.f32 %v1591_v50, %v759_v29  ;;  %v1391_v29 = vld [vmem:[%s2550_s17 + $0x60] sm:$0xff] }
 0x25c   : > { %v1682_v30 = vpop.f32.mrf.mxu0  ;;  %v1379_v50 = vld [vmem:[%s2550_s17] sm:$0xff] }
 0x25d   : > { %v1390_v30 = vld [vmem:[%s2550_s17 + $0x58] sm:$0xff] }
 0x262   : > { %v840_v32 = vpop.f32.mrf.mxu0 }
 0x263   : > { %v841_v34 = vadd.f32 %v1593_v31, %v840_v32  ;;  %v1389_v31 = vld [vmem:[%s2550_s17 + $0x50] sm:$0xff]  ;;  %v1388_v32 = vld [vmem:[%s2550_s17 + $0x48] sm:$0xff] }
 0x264   : > { %v1693_v35 = vpop.f32.mrf.mxu0 }
 0x265   : > { %v932_v36 = vmul.f32 %v928_v33, %v841_v34  ;;  %v931_v39 = vmul.f32 %v927_v37, %v841_v34  ;;  %v930_v44 = vmul.f32 %v926_v40, %v841_v34  ;;  %v929_v51 = vmul.f32 %v925_v45, %v841_v34  ;;  %v1386_v34 = vld [vmem:[%s2550_s17 + $0x38] sm:$0xff]  ;;  %v1385_v35 = vld [vmem:[%s2550_s17 + $0x30] sm:$0xff] }
 0x267   : > { %1706 = vmatpush3.xpose.msk.msra.mxu1 %vm650_vm0, %v932_v36  ;;  %v1384_v36 = vld [vmem:[%s2550_s17 + $0x28] sm:$0xff] }
 0x268   : > { %1707 = vmatprep.subr.mxu1 %v2029_v8 }
 0x26a   : > { %v921_v41 = vpop.f32.mrf.mxu0 }
 0x26b   : > { %v922_v42 = vadd.f32 %v1595_v38, %v921_v41  ;;  %1708 = vmatpush3.xpose.msk.msra.mxu1 %vm650_vm0, %v931_v39  ;;  %v1382_v38 = vld [vmem:[%s2550_s17 + $0x18] sm:$0xff] }
 0x26c   : > { %v1704_v43 = vpop.f32.mrf.mxu0  ;;  %1709 = vmatprep.subr.mxu1 %v2029_v8 }
 0x26d   : > { %v936_v46 = vmul.f32 %v928_v33, %v922_v42  ;;  %v935_v47 = vmul.f32 %v927_v37, %v922_v42  ;;  %v934_v48 = vmul.f32 %v926_v40, %v922_v42  ;;  %v933_v49 = vmul.f32 %v925_v45, %v922_v42  ;;  %v1387_v33 = vld [vmem:[%s2550_s17 + $0x40] sm:$0xff] }
 0x26e   : > { %v1383_v37 = vld [vmem:[%s2550_s17 + $0x20] sm:$0xff] }
 0x26f   : > { %1710 = vmatpush3.xpose.msk.msra.mxu1 %vm650_vm0, %v930_v44  ;;  %v1606_v43 = vld [vmem:[%s2546_s13] ss:$0 sm:$0xff] }
 0x270   : > { %1711 = vmatprep.subr.mxu1 %v2029_v8  ;;  %v1607_v45 = vld [vmem:[%s2547_s14] ss:$0 sm:$0xff] }
 0x273   : > { %1712 = vmatpush3.xpose.msk.msra.mxu1 %vm650_vm0, %v929_v51  ;;  %v1608_v51 = vld [vmem:[%s2549_s16] ss:$0 sm:$0xff] }
 0x274   : > { %1738 = vmatprep.subr.mxu1 %v2029_v8 }
 0x276   : > { %1714 = vmatmul.mubr.msk.f32.vlgmr.msra.gmra.mxu1 %vm650_vm0, %v760_v52 }
 0x277   : > { %1746 = vmatprep.mubr.msk.f32.mxu1 %vm2030_vm1, %v2029_v8  ;;  %1739 = vmatpush3.msra.mxu1 %v1183_v1 }
 0x278   : > { %1740 = vmatprep.subr.mxu1 %v2029_v8 }
 0x279   : > { %1741 = vmatpush3.msra.mxu1 %v1182_v2 }
 0x27a   : > { %1742 = vmatprep.subr.mxu1 %v2029_v8 }
 0x27b   : > { %1743 = vmatpush3.msra.mxu1 %v1181_v3 }
 0x27c   : > { %1744 = vmatprep.subr.mxu1 %v2029_v8 }
 0x27d   : > { %1745 = vmatpush3.msra.mxu1 %v1180_v9 }
 0x27e   : > { %1760 = vmatprep.subr.mxu1 %v2029_v8 }
 0x336   : > { %v1018_v53 = vpop.f32.mrf.mxu1 }
 0x337   : > { %v1022_v54 = vsel %vm650_vm0, %v1018_v53, -inf }
 0x338   : > { %1023 = vmax.xlane.f32.xlu1 %v1022_v54  ;;  %v1715_v55 = vpop.f32.mrf.mxu1 }
 0x3c1   : > { %v1024_v60 = vpop.xlane.xlu1 %1023 }
 0x3c2   : > { %v1025_v61 = vsub.f32 %v1018_v53, %v1024_v60 }
 0x3c4   : > { %v1026_v62 = vmul.f32 1.442695, %v1025_v61 }
 0x3c6   : > { %1868 = vpow2.f32 %v1026_v62 }
 0x3d3   : > { %v1869_v63 = vpop.eup %1868 }
 0x3d4   : > { %1725 = vmatmul.mubr.msk.f32.vlgmr.msra.gmra.mxu0 %vm650_vm0, %v1869_v63 }
 0x3d5   : > { %1728 = vmatpush3.msra.mxu0 %v936_v46  ;;  %1735 = vmatprep.mubr.msk.f32.mxu0 %vm2030_vm1, %v2029_v8 }
 0x3d6   : > { %1729 = vmatprep.subr.mxu0 %v2029_v8 }
 0x3d7   : > { %1730 = vmatpush3.msra.mxu0 %v935_v47 }
 0x3d8   : > { %1731 = vmatprep.subr.mxu0 %v2029_v8 }
 0x3d9   : > { %1732 = vmatpush3.msra.mxu0 %v934_v48  ;;  %v1381_v48 = vld [vmem:[%s2550_s17 + $0x10] sm:$0xff] }
 0x3da   : > { %1733 = vmatprep.subr.mxu0 %v2029_v8 }
 0x3db   : > { %1734 = vmatpush3.msra.mxu0 %v933_v49  ;;  %v1380_v49 = vld [vmem:[%s2550_s17 + $0x8] sm:$0xff] }
 0x3dc   : > { %1749 = vmatprep.subr.mxu0 %v2029_v8 }
 0x494   : > { %v1101_v4 = vpop.f32.mrf.mxu0 }
 0x495   : > { %1870 = vrcp.f32 %v1101_v4 }
 0x496   : > { %v1726_v5 = vpop.f32.mrf.mxu0 }
 0x4a2   : > { %v1871_v6 = vpop.eup %1870 }
 0x4a3   : > { %v1106_v7 = vmul.f32 %v1871_v6, %v1869_v63 }
 0x4a5   : > { %1736 = vmatmul.mubr.msk.f32.vlgmr.msra.gmra.mxu0 %vm650_vm0, %v1106_v7 }
 0x4a6   : > { %1757 = vmatprep.mubr.msk.f32.mxu0 %vm2030_vm1, %v2029_v8  ;;  %1750 = vmatpush3.msra.mxu0 %v1297_v23 }
 0x4a7   : > { %1751 = vmatprep.subr.mxu0 %v2029_v8 }
 0x4a8   : > { %1752 = vmatpush3.msra.mxu0 %v1296_v24 }
 0x4a9   : > { %1753 = vmatprep.subr.mxu0 %v2029_v8 }
 0x4aa   : > { %1754 = vmatpush3.msra.mxu0 %v1295_v25 }
 0x4ab   : > { %1755 = vmatprep.subr.mxu0 %v2029_v8 }
 0x565   : > { %v1176_v10 = vpop.f32.mrf.mxu0 }
 0x566   : > { %1747 = vmatmul.mubr.msk.f32.vlgmr.msra.gmra.mxu1 %vm650_vm0, %v1176_v10 }
 0x567   : > { %v1737_v11 = vpop.f32.mrf.mxu0  ;;  %1792 = vmatprep.mubr.msk.f32.mxu1 %vm2030_vm1, %v2029_v8  ;;  %1761 = vmatpush3.msra.mxu1 %v1394_v26 }
 0x568   : > { %1762 = vmatprep.subr.mxu1 %v2029_v8 }
 0x569   : > { %1763 = vmatpush3.msra.mxu1 %v1393_v27 }
 0x56a   : > { %1764 = vmatprep.subr.mxu1 %v2029_v8 }
 0x56b   : > { %1765 = vmatpush3.msra.mxu1 %v1392_v28 }
 0x56c   : > { %1766 = vmatprep.subr.mxu1 %v2029_v8 }
 0x56d   : > { %1767 = vmatpush3.msra.mxu1 %v1391_v29 }
 0x56e   : > { %1768 = vmatprep.subr.mxu1 %v2029_v8 }
 0x56f   : > { %1769 = vmatpush3.msra.mxu1 %v1390_v30 }
 0x570   : > { %1770 = vmatprep.subr.mxu1 %v2029_v8 }
 0x571   : > { %1771 = vmatpush3.msra.mxu1 %v1389_v31 }
 0x572   : > { %1772 = vmatprep.subr.mxu1 %v2029_v8 }
 0x573   : > { %1773 = vmatpush3.msra.mxu1 %v1388_v32 }
 0x574   : > { %1774 = vmatprep.subr.mxu1 %v2029_v8 }
 0x575   : > { %1775 = vmatpush3.msra.mxu1 %v1387_v33 }
 0x576   : > { %1776 = vmatprep.subr.mxu1 %v2029_v8 }
 0x577   : > { %1777 = vmatpush3.msra.mxu1 %v1386_v34 }
 0x578   : > { %1778 = vmatprep.subr.mxu1 %v2029_v8 }
 0x579   : > { %1779 = vmatpush3.msra.mxu1 %v1385_v35 }
 0x57a   : > { %1780 = vmatprep.subr.mxu1 %v2029_v8 }
 0x57b   : > { %1781 = vmatpush3.msra.mxu1 %v1384_v36 }
 0x57c   : > { %1782 = vmatprep.subr.mxu1 %v2029_v8 }
 0x57d   : > { %1783 = vmatpush3.msra.mxu1 %v1383_v37 }
 0x57e   : > { %1784 = vmatprep.subr.mxu1 %v2029_v8 }
 0x57f   : > { %1785 = vmatpush3.msra.mxu1 %v1382_v38 }
 0x580   : > { %1786 = vmatprep.subr.mxu1 %v2029_v8 }
 0x581   : > { %1787 = vmatpush3.msra.mxu1 %v1381_v48 }
 0x582   : > { %1788 = vmatprep.subr.mxu1 %v2029_v8 }
 0x583   : > { %1789 = vmatpush3.msra.mxu1 %v1380_v49 }
 0x584   : > { %1790 = vmatprep.subr.mxu1 %v2029_v8 }
 0x585   : > { %1791 = vmatpush3.msra.mxu1 %v1379_v50 }
 0x626   : > { %v1260_v13 = vpop.f32.mrf.mxu1 }
 0x627   : > { %v1261_v14 = vadd.f32 %v1604_v12, %v1260_v13 }
 0x628   : > { %v1748_v15 = vpop.f32.mrf.mxu1 }
 0x629   : > { %v2409_v16 = vadd.f32 %v1261_v14, %v2264_v0  ;;  %v1294_v0 = vld [vmem:[#allocation7] sm:$0xff] }
 0x62a   : > { %1756 = vmatpush3.msra.mxu0 %v1294_v0 }
 0x62b   : > { %v1267_v17 = vsel %vm650_vm0, %v2409_v16, 0.0 }
 0x62c   : > { %1268 = vadd.xlane.f32.xlu1 %v1267_v17 }
 0x6b5   : > { %v1269_v18 = vpop.xlane.xlu1 %1268 }
 0x6b6   : > { %v1270_v19 = vmul.f32 0.03125, %v1269_v18 }
 0x6b8   : > { %v1271_v20 = vsub.f32 %v2409_v16, %v1270_v19 }
 0x6ba   : > { %v1272_v21 = vmul.f32 %v1271_v20, %v1271_v20 }
 0x6bc   : > { %v1273_v22 = vsel %vm650_vm0, %v1272_v21, 0.0 }
 0x6bd   : > { %1274 = vadd.xlane.f32.xlu0 %v1273_v22 }
 0x746   : > { %v1275_v39 = vpop.xlane.xlu0 %1274 }
 0x747   : > { %v1276_v40 = vmul.f32 0.03125, %v1275_v39 }
 0x749   : > { %v1277_v41 = vadd.f32 1e-05, %v1276_v40 }
 0x74b   : > { %1872 = vrsqrt.f32 %v1277_v41 }
 0x758   : > { %v1873_v42 = vpop.eup %1872 }
 0x759   : > { %v1279_v44 = vmul.f32 %v1873_v42, %v1271_v20 }
 0x75b   : > { %v1286_v46 = vmul.f32 %v1606_v43, %v1279_v44 }
 0x75d   : > { %v1293_v47 = vadd.f32 %v1607_v45, %v1286_v46 }
 0x75f   : > { %1758 = vmatmul.mubr.msk.f32.vlgmr.msra.gmra.mxu0 %vm650_vm0, %v1293_v47 }
 0x81f   : > { %v1374_v52 = vpop.f32.mrf.mxu0 }
 0x820   : > { %v1375_v53 = vadd.f32 %v1608_v51, %v1374_v52 }
 0x821   : > { %v1759_v54 = vpop.f32.mrf.mxu0 }
 0x822   : > { %v1378_v55 = vmax.f32 %v1375_v53, 0.0 }
 0x824   : > { %1793 = vmatmul.mubr.f32.vlgmr.msra.gmra.mxu1 %v1378_v55 }
 0x8e4   : > { %v1468_v57 = vpop.f32.mrf.mxu1 }
 0x8e5   : > { %v1469_v8 = vadd.f32 %v1610_v56, %v1468_v57 }
 0x8e6   : > { %v1794_v58 = vpop.f32.mrf.mxu1 }
 0x8e7   : > { %v1472_v59 = vadd.f32 %v1469_v8, %v2409_v16 }
 0x8e9   : > { %1473 = vst.msk [vmem:[%s646_s22] sm:$0xff] %vm650_vm0, %v1472_v59 }
 0x8ea   : > { %1967 = shalt.err (!%p1964_p9)
}
 0x8eb   : > { %s1968_s0 = scalar_lea.hbm %s1486_s21, 128  ;;  %s1972_s28 = scalar_lea.hbm %s2602_s27, 256 }
 0x8ec   : > { %p1969_p13 = scmp.ne.s32.totalorder %s1486_s21, %s1968_s0  ;;  %p1973_p4 = scmp.lt.s32.totalorder %s1486_s21, %s2602_s27 }
 0x8ed   : > { %p1974_p8 = scmp.lt.s32.totalorder %s1972_s28, %s1968_s0 }
 0x8ee   : > { %p1970_p5 = pnand %p1969_p13, %p2603_p0 }
 0x8ef   : > { %p1975_p3 = por %p1974_p8, %p1973_p4 }
 0x8f0   : > { %p1971_p10 = pneg %p1970_p5 }
 0x8f2   : > { %p1976_p11 = pnand %p1975_p3, %p1971_p10 }
 0x8f4   : > { %1979 = shalt.err (!%p1976_p11)
}
 0x8f5   : > { %1805 = dma.vmem_to_hbm [thread:$0]  (%p2603_p0), %s1489_s25, 128, %s1486_s21, %s1475_s19  }
 0x8f6 PF: > { %s2604_s3 = sld [smem:[#allocation12_spill]] }
 0x8f7   : > { %s2605_s15 = sld [smem:[#allocation15_spill]] }
 0x8f8   : > { %s2606_s1 = sld [smem:[#allocation14_spill]] }
 0x8fc   : > { %s1500_s26 = sand.u32 1, %s2604_s3  }
 0x8fd   : > { %p2607_p1 = scmp.ne.s32.totalorder %s2605_s15, 0  ;;  %s1501_s24 = scalar_lea.sflag [#allocation4], %s1500_s26 }
 0x8fe   : > { %p2608_p2 = scmp.ge.s32.totalorder %s2606_s1, 2 }
 0x900   : > { %p1819_p6 = pnand %p2608_p2, %p2607_p1 }
 0x902   : > { %p1820_p12 = pneg %p1819_p6 }
 0x904   : > { %2005 = dma.done.wait (%p1820_p12), %s1501_s24, 128  }
 0x905   : > { %2007 = vsyncadd (%p1820_p12), %s1501_s24, 4294967168  ;;  %s2609_s21 = sld [smem:[#allocation16_spill]]  ;;  %s2612_s0 = smov %s2014_s30 }
 0x906   : > { %s2610_s20 = sld [smem:[#allocation13_spill]] }
 0x907   : > { %s2611_s23 = sld [smem:[#allocation18_spill]] }
 0x90b   : > { %p33_p7 = scmp.ge.s32.totalorder %s2609_s21, 4  }
 0x90c   : > { %s2613_s30 = smov %s2610_s20 }
 0x90d   : > { %s2614_s20 = smov %s2611_s23  ;;  %35 = sbr.rel (!%p33_p7) target bundleno = 15 (0xf), region = 149 }
 0x912   :  { %1506 = vsyncpa [#allocation3], 1 }
 0x913   :  { %1508 = vsyncpa [#allocation3 + $0x1], 1 }
 0x914   :  { %1509 = vsyncpa [#allocation6], 1 }
 0x915   :  { %1510 = vsyncpa [#allocation4], 1 }
 0x916   :  { %1512 = vsyncpa [#allocation4 + $0x1], 1 }

</bundles_post_ra>
